<compile_context>
chip_gen: v7x
topology: tpu7x:2x2x1
jax: 0.10.0
libtpu: 0.0.40
codegen_flags: <defaults>
</compile_context>

<pallas_src>
import functools
import math

import jax
import jax.numpy as jnp
from jax.experimental import pallas as pl
from jax.experimental.pallas import tpu as pltpu


def _round_up(n, m):
    return ((n + m - 1) // m) * m


def _pick_batch_tile(batch):
    """Batch (M) tile.  Small batches: one 8-sublane-aligned block.
    Large batches: 256/512-row tiles, but only if that still leaves >=2 grid
    steps so dimension_semantics=("parallel",) can shard across both v7x TCs."""
    if batch <= 256:
        return max(8, _round_up(batch, 8))
    for cand in (512, 256, 128):
        if batch >= 2 * cand:
            return cand
    return 128


def _fused_mlp_kernel(*refs, relu_flags):
    """refs = (x_ref, w1_ref, b1_ref, ..., wL_ref, bL_ref, o_ref).

    Computes the full MLP on one (batch_tile, features_padded) block; all
    intermediates live in vregs / VMEM only.
    """
    x_ref, o_ref = refs[0], refs[-1]
    wb_refs = refs[1:-1]
    h = x_ref[...]                                   # already bf16 (weight dtype)
    for i, relu in enumerate(relu_flags):
        w_ref = wb_refs[2 * i]
        b_ref = wb_refs[2 * i + 1]
        # bf16 MXU inputs (the astype is a no-op for layer 1), f32 accumulation;
        # bias add + ReLU in f32 on the VPU.
        y = jnp.dot(h.astype(w_ref.dtype), w_ref[...],
                    preferred_element_type=jnp.float32)
        y = y + b_ref[...]                           # (1, out_pad) broadcasts over batch
        if relu:
            y = jnp.maximum(y, 0.0)
        h = y
    o_ref[...] = h.astype(o_ref.dtype)


class Net:
    """JAX/Pallas port of the PyTorch Net module (forward pass only)."""

    def __init__(self, obs_size, net_arch, n_actions, key,
                 weight_dtype=jnp.bfloat16):
        self.obs_size = int(obs_size)
        self.n_actions = int(n_actions)
        self.weight_dtype = weight_dtype
        self.in_pad = _round_up(self.obs_size, 128)

        sizes_in = [self.obs_size] + list(net_arch)
        sizes_out = list(net_arch) + [self.n_actions]

        self.params = []       # (W^T padded (in_pad, out_pad) bf16, b padded (1, out_pad) f32)
        self.relu_flags = []   # ReLU after this Linear?
        prev_pad = self.in_pad
        for i, (fan_in, fan_out) in enumerate(zip(sizes_in, sizes_out)):
            key, kw, kb = jax.random.split(key, 3)
            bound = 1.0 / math.sqrt(fan_in)          # PyTorch default Linear init
            w = jax.random.uniform(kw, (fan_out, fan_in), jnp.float32, -bound, bound)
            b = jax.random.uniform(kb, (fan_out,), jnp.float32, -bound, bound)
            out_pad = _round_up(fan_out, 128)
            # Zero-padding is exact: padded output lanes are 0, and the padded
            # input rows of the next layer multiply finite zeros.
            w_t = jnp.zeros((prev_pad, out_pad), jnp.float32)
            w_t = w_t.at[:fan_in, :fan_out].set(w.T)
            b_p = jnp.zeros((1, out_pad), jnp.float32).at[0, :fan_out].set(b)
            self.params.append((w_t.astype(weight_dtype), b_p))
            # PyTorch: Sequential(*layers[:-1], Linear(h_k, n_actions)) drops the
            # LAST ReLU -> ReLU after hidden Linear i only for i < len(net_arch)-1,
            # never after the output Linear.
            self.relu_flags.append(bool(i < len(net_arch) - 1))
            prev_pad = out_pad
        self.out_pad = prev_pad

        self._weight_bytes = sum(
            w.size * w.dtype.itemsize + b.size * b.dtype.itemsize
            for w, b in self.params)
        self._max_width = max([self.in_pad] + [w.shape[1] for w, _ in self.params])

    def __call__(self, x):
        if x.ndim > 2:
            x = x.reshape(x.shape[0], -1)
        B, F = x.shape
        if F != self.obs_size:
            raise ValueError(f"expected {self.obs_size} features, got {F}")

        # Stream x to the kernel in the weight dtype (bf16): the kernel feeds
        # the MXU in bf16 anyway, so this is numerically identical but halves
        # the dominant HBM->VMEM stream (the kernel is memory-bound at large B).
        x = x.astype(self.weight_dtype)
        if self.in_pad != F:
            # Feature (K) padding MUST remain finite zeros: zero weight rows only
            # cancel padded K lanes if those lanes are 0 (NaN*0 = NaN).
            x = jnp.pad(x, ((0, 0), (0, self.in_pad - F)))

        bt = _pick_batch_tile(B)
        grid_b = pl.cdiv(B, bt)
        # No batch padding: Pallas bounds the partial last block; garbage rows in
        # that input tile only affect the corresponding (discarded) output rows
        # because the MLP mixes no information across the batch dimension.

        flat_params = []
        in_specs = [pl.BlockSpec((bt, self.in_pad), lambda i: (i, 0))]
        for w_t, b in self.params:
            flat_params += [w_t, b]
            # Constant index_map + single buffering: weights stay VMEM-resident
            # across grid steps without a 2x double-buffer footprint.
            in_specs.append(pl.BlockSpec(w_t.shape, lambda i: (0, 0),
                                         pipeline_mode=pl.Buffered(1)))
            in_specs.append(pl.BlockSpec(b.shape, lambda i: (0, 0),
                                         pipeline_mode=pl.Buffered(1)))

        flops = 2 * B * sum(w.shape[0] * w.shape[1] for w, _ in self.params)
        bytes_accessed = (B * self.in_pad * x.dtype.itemsize
                          + self._weight_bytes
                          + B * self.out_pad * 4)

        # VMEM budget (per TensorCore): 2x x-tile (double-buffered) + 1x weights
        # (single-buffered) + 2x out-tile + headroom for the widest f32
        # intermediate.  Only raise the scoped limit when the conservative
        # default (16 MiB on v5e) would be exceeded; cap at 64 MiB (v7x per-TC).
        vmem_needed = (2 * bt * self.in_pad * x.dtype.itemsize
                       + self._weight_bytes
                       + 2 * bt * self.out_pad * 4
                       + 2 * bt * self._max_width * 4)
        cp_kwargs = dict(dimension_semantics=("parallel",))
        vmem_budget = int(1.3 * vmem_needed)
        if vmem_budget > 16 * 1024 * 1024:
            cp_kwargs["vmem_limit_bytes"] = min(vmem_budget, 64 * 1024 * 1024)

        out = pl.pallas_call(
            functools.partial(_fused_mlp_kernel,
                              relu_flags=tuple(self.relu_flags)),
            out_shape=jax.ShapeDtypeStruct((B, self.out_pad), jnp.float32),
            grid=(grid_b,),
            in_specs=in_specs,
            out_specs=pl.BlockSpec((bt, self.out_pad), lambda i: (i, 0)),
            compiler_params=pltpu.CompilerParams(**cp_kwargs),
            cost_estimate=pl.CostEstimate(flops=flops, transcendentals=0,
                                          bytes_accessed=bytes_accessed),
        )(x, *flat_params)
        return out[:, :self.n_actions]

    def reference(self, x):
        """Pure-jnp reference with identical dtype handling (bf16 weights and
        bf16 activations at each MXU input, f32 accumulation)."""
        if x.ndim > 2:
            x = x.reshape(x.shape[0], -1)
        h = x.astype(self.weight_dtype)
        if self.in_pad != h.shape[1]:
            h = jnp.pad(h, ((0, 0), (0, self.in_pad - h.shape[1])))
        for (w_t, b), relu in zip(self.params, self.relu_flags):
            y = jnp.dot(h.astype(w_t.dtype), w_t,
                        preferred_element_type=jnp.float32) + b
            if relu:
                y = jnp.maximum(y, 0.0)
            h = y
        return h[:, :self.n_actions]


if __name__ == "__main__":
    key = jax.random.PRNGKey(0)
    k_in, k_in2, k_net = jax.random.split(key, 3)

    # Small DQN-like config: image-ish observation flattened to obs_size.
    batch, C, H, W = 2, 4, 16, 16
    obs_size = C * H * W            # 1024
    net_arch = [64, 32]
    n_actions = 8

    net = Net(obs_size, net_arch, n_actions, k_net)

    # 4-D input (forward flattens it, mirroring x.view(x.size(0), -1)).
    x = jax.random.normal(k_in, (batch, C, H, W), jnp.float32)
    out = jax.block_until_ready(net(x))
    ref = net.reference(x)
    assert out.shape == (batch, n_actions), out.shape
    err = float(jnp.max(jnp.abs(out - ref)))
    assert jnp.allclose(out, ref, atol=2e-3, rtol=2e-3), f"max abs err={err}"

    # 2-D input whose batch is not a sublane multiple: exercises the
    # partial-last-block path that replaced the wrapper-side batch pad.
    x2 = jax.random.normal(k_in2, (13, obs_size), jnp.float32)
    out2 = jax.block_until_ready(net(x2))
    ref2 = net.reference(x2)
    assert out2.shape == (13, n_actions), out2.shape
    err2 = float(jnp.max(jnp.abs(out2 - ref2)))
    assert jnp.allclose(out2, ref2, atol=2e-3, rtol=2e-3), f"max abs err={err2}"

    print("KERNEL_OK")
</pallas_src>

<mosaic_0001>
module attributes {stable_mosaic.version = 11 : i64} {
  func.func @_fused_mlp_kernel(%arg0: i32, %arg1: memref<8x1024xbf16, #tpu.memory_space<vmem>>, %arg2: memref<1024x128xbf16, #tpu.memory_space<vmem>>, %arg3: memref<1x128xf32, #tpu.memory_space<vmem>>, %arg4: memref<128x128xbf16, #tpu.memory_space<vmem>>, %arg5: memref<1x128xf32, #tpu.memory_space<vmem>>, %arg6: memref<128x128xbf16, #tpu.memory_space<vmem>>, %arg7: memref<1x128xf32, #tpu.memory_space<vmem>>, %arg8: memref<8x128xf32, #tpu.memory_space<vmem>>) attributes {dimension_semantics = [#tpu.dimension_semantics<parallel>], iteration_bounds = array<i64: 1>, scalar_prefetch = 0 : i64, scratch_operands = 0 : i64, tpu.core_type = #tpu.core_type<tc>, window_params = [{transform_indices = @transform_0, window_bounds = array<i64: 8, 1024>}, {pipeline_mode = #tpu.pipeline_mode<synchronous>, transform_indices = @transform_1, window_bounds = array<i64: 1024, 128>}, {pipeline_mode = #tpu.pipeline_mode<synchronous>, transform_indices = @transform_2, window_bounds = array<i64: 1, 128>}, {pipeline_mode = #tpu.pipeline_mode<synchronous>, transform_indices = @transform_3, window_bounds = array<i64: 128, 128>}, {pipeline_mode = #tpu.pipeline_mode<synchronous>, transform_indices = @transform_4, window_bounds = array<i64: 1, 128>}, {pipeline_mode = #tpu.pipeline_mode<synchronous>, transform_indices = @transform_5, window_bounds = array<i64: 128, 128>}, {pipeline_mode = #tpu.pipeline_mode<synchronous>, transform_indices = @transform_6, window_bounds = array<i64: 1, 128>}, {transform_indices = @transform_7, window_bounds = array<i64: 8, 128>}]} {
    %c0 = arith.constant 0 : index
    %c0_0 = arith.constant 0 : index
    %0 = vector.load %arg1[%c0, %c0_0] : memref<8x1024xbf16, #tpu.memory_space<vmem>>, vector<8x1024xbf16>
    %c0_1 = arith.constant 0 : index
    %c0_2 = arith.constant 0 : index
    %1 = vector.load %arg2[%c0_1, %c0_2] : memref<1024x128xbf16, #tpu.memory_space<vmem>>, vector<1024x128xbf16>
    %cst = arith.constant dense<0.000000e+00> : vector<8x128xf32>
    %2 = tpu.matmul %0, %1, %cst {dimension_numbers = #tpu.dot_dimension_numbers<[1], [0], [0], [1], [0, 0, 1, 1], [], []>} : vector<8x1024xbf16>, vector<1024x128xbf16>, vector<8x128xf32> -> vector<8x128xf32>
    %c0_3 = arith.constant 0 : index
    %c0_4 = arith.constant 0 : index
    %3 = vector.load %arg3[%c0_3, %c0_4] : memref<1x128xf32, #tpu.memory_space<vmem>>, vector<1x128xf32>
    %4 = vector.broadcast %3 : vector<1x128xf32> to vector<8x128xf32>
    %5 = arith.addf %2, %4 : vector<8x128xf32>
    %cst_5 = arith.constant 0.000000e+00 : f32
    %6 = vector.broadcast %cst_5 : f32 to vector<8x128xf32>
    %7 = arith.maximumf %5, %6 : vector<8x128xf32>
    %8 = arith.truncf %7 : vector<8x128xf32> to vector<8x128xbf16>
    %c0_6 = arith.constant 0 : index
    %c0_7 = arith.constant 0 : index
    %9 = vector.load %arg4[%c0_6, %c0_7] : memref<128x128xbf16, #tpu.memory_space<vmem>>, vector<128x128xbf16>
    %cst_8 = arith.constant dense<0.000000e+00> : vector<8x128xf32>
    %10 = tpu.matmul %8, %9, %cst_8 {dimension_numbers = #tpu.dot_dimension_numbers<[1], [0], [0], [1], [0, 0, 1, 1], [], []>} : vector<8x128xbf16>, vector<128x128xbf16>, vector<8x128xf32> -> vector<8x128xf32>
    %c0_9 = arith.constant 0 : index
    %c0_10 = arith.constant 0 : index
    %11 = vector.load %arg5[%c0_9, %c0_10] : memref<1x128xf32, #tpu.memory_space<vmem>>, vector<1x128xf32>
    %12 = vector.broadcast %11 : vector<1x128xf32> to vector<8x128xf32>
    %13 = arith.addf %10, %12 : vector<8x128xf32>
    %14 = arith.truncf %13 : vector<8x128xf32> to vector<8x128xbf16>
    %c0_11 = arith.constant 0 : index
    %c0_12 = arith.constant 0 : index
    %15 = vector.load %arg6[%c0_11, %c0_12] : memref<128x128xbf16, #tpu.memory_space<vmem>>, vector<128x128xbf16>
    %cst_13 = arith.constant dense<0.000000e+00> : vector<8x128xf32>
    %16 = tpu.matmul %14, %15, %cst_13 {dimension_numbers = #tpu.dot_dimension_numbers<[1], [0], [0], [1], [0, 0, 1, 1], [], []>} : vector<8x128xbf16>, vector<128x128xbf16>, vector<8x128xf32> -> vector<8x128xf32>
    %c0_14 = arith.constant 0 : index
    %c0_15 = arith.constant 0 : index
    %17 = vector.load %arg7[%c0_14, %c0_15] : memref<1x128xf32, #tpu.memory_space<vmem>>, vector<1x128xf32>
    %18 = vector.broadcast %17 : vector<1x128xf32> to vector<8x128xf32>
    %19 = arith.addf %16, %18 : vector<8x128xf32>
    %c0_16 = arith.constant 0 : index
    %c0_17 = arith.constant 0 : index
    %20 = vector.load %arg8[%c0_16, %c0_17] : memref<8x128xf32, #tpu.memory_space<vmem>>, vector<8x128xf32>
    tpu.vector_store %arg8[%c0_16, %c0_17], %19 {strides = array<i32>} : memref<8x128xf32, #tpu.memory_space<vmem>>, vector<8x128xf32>,
    return
  }
  func.func @transform_0(%arg0: i32) -> (i32, i32) {
    %c0_i32 = arith.constant 0 : i32
    %c0_i32_0 = arith.constant 0 : i32
    return %arg0, %c0_i32 : i32, i32
  }
  func.func @transform_1(%arg0: i32) -> (i32, i32) {
    %c0_i32 = arith.constant 0 : i32
    %c0_i32_0 = arith.constant 0 : i32
    %c0_i32_1 = arith.constant 0 : i32
    return %c0_i32, %c0_i32_0 : i32, i32
  }
  func.func @transform_2(%arg0: i32) -> (i32, i32) {
    %c0_i32 = arith.constant 0 : i32
    %c0_i32_0 = arith.constant 0 : i32
    %c0_i32_1 = arith.constant 0 : i32
    return %c0_i32, %c0_i32_0 : i32, i32
  }
  func.func @transform_3(%arg0: i32) -> (i32, i32) {
    %c0_i32 = arith.constant 0 : i32
    %c0_i32_0 = arith.constant 0 : i32
    %c0_i32_1 = arith.constant 0 : i32
    return %c0_i32, %c0_i32_0 : i32, i32
  }
  func.func @transform_4(%arg0: i32) -> (i32, i32) {
    %c0_i32 = arith.constant 0 : i32
    %c0_i32_0 = arith.constant 0 : i32
    %c0_i32_1 = arith.constant 0 : i32
    return %c0_i32, %c0_i32_0 : i32, i32
  }
  func.func @transform_5(%arg0: i32) -> (i32, i32) {
    %c0_i32 = arith.constant 0 : i32
    %c0_i32_0 = arith.constant 0 : i32
    %c0_i32_1 = arith.constant 0 : i32
    return %c0_i32, %c0_i32_0 : i32, i32
  }
  func.func @transform_6(%arg0: i32) -> (i32, i32) {
    %c0_i32 = arith.constant 0 : i32
    %c0_i32_0 = arith.constant 0 : i32
    %c0_i32_1 = arith.constant 0 : i32
    return %c0_i32, %c0_i32_0 : i32, i32
  }
  func.func @transform_7(%arg0: i32) -> (i32, i32) {
    %c0_i32 = arith.constant 0 : i32
    %c0_i32_0 = arith.constant 0 : i32
    return %arg0, %c0_i32 : i32, i32
  }
}

</mosaic_0001>

<bundles_post_ra>
// kernel: tpu_custom_call.1
= control target key start
LH: loop header
LB: loop body
LE: loop exit
PB: predicated region body
PF: predicated region fallthrough
CT: control target
= control target key end

     0   :  { %12 = vsyncpa [#allocation3], 0  ;;  %s1695_s0 = inlined_call_operand.hbm [shape: bf16[2,1024], index: 0, kind: input, shape index: {}]   ;;  %s1696_s1 = inlined_call_operand.hbm [shape: bf16[1024,128], index: 1, kind: input, shape index: {}]   ;;  %s1697_s2 = inlined_call_operand.vmem [shape: f32[1,128], index: 2, kind: input, shape index: {}]   ;;  %s1698_s3 = inlined_call_operand.hbm [shape: bf16[128,128], index: 3, kind: input, shape index: {}]   ;;  %s1699_s4 = inlined_call_operand.vmem [shape: f32[1,128], index: 4, kind: input, shape index: {}]   ;;  %s1700_s5 = inlined_call_operand.hbm [shape: bf16[128,128], index: 5, kind: input, shape index: {}]   ;;  %s1701_s6 = inlined_call_operand.vmem [shape: f32[1,128], index: 6, kind: input, shape index: {}]   ;;  %s1702_s7 = inlined_call_operand.hbm [shape: f32[2,128], index: 7, kind: output, shape index: {}]  }
   0x1   :  { %13 = vsyncpa [#allocation6], 0 }
   0x2   :  { %14 = vsyncpa [#allocation9], 0 }
   0x3   :  { %15 = vsyncpa [#allocation4], 0 }
   0x4   :  { %20 = vsyncadd [#allocation3], 384  ;;  %s1538_s24 = smov [#allocation5]   ;;  %s1420_s28 = scalar_lea.hbm %s1696_s1, 8192 }
   0x5   :  { %s33_s25 = sshll.u32 %s1538_s24, 4  ;;  %p1421_p0 = scmp.ne.s32.totalorder %s1696_s1, %s1420_s28  ;;  %s34_s25 = int_to_ptr.vmem [resolvable:$true] %s33_s25 }
   0x6   :  { %p1424_p1 = scmp.lt.u32.totalorder %s1420_s28, %s1696_s1 }
   0x8   :  { %p1426_p2 = pnand %p1424_p1, %p1421_p0 }
   0xa   :  { %1429 = shalt.err (!%p1426_p2)
}
   0xb   :  { %s1430_s10 = scalar_lea.vmem %s34_s25, 8192  ;;  %p1435_p4 = scmp.lt.s32.totalorder %s34_s25, %s34_s25 }
   0xc   :  { %p1431_p3 = scmp.ne.s32.totalorder %s34_s25, %s1430_s10  ;;  %p1436_p5 = scmp.lt.s32.totalorder %s1430_s10, %s1430_s10 }
   0xe   :  { %p1437_p6 = por %p1436_p5, %p1435_p4 }
  0x10   :  { %p1438_p7 = pnand %p1437_p6, %p1431_p3 }
  0x12   :  { %1441 = shalt.err (!%p1438_p7)
}
  0x13   :  { %s1539_s11 = smov 64   ;;  %s1540_s12 = smov 4  }
  0x14   :  { %39 = dma.hbm_to_vmem [thread:$0]  %s1696_s1, 8192, %s34_s25, [#allocation6], %s1539_s11, %s1539_s11, %s1540_s12  }
  0x15   :  { %s1541_s15 = smov [#allocation2]   ;;  %s1442_s19 = scalar_lea.hbm %s1695_s0, 128 }
  0x16   :  { %s21_s16 = sshll.u32 %s1541_s15, 4  ;;  %p1443_p8 = scmp.ne.s32.totalorder %s1695_s0, %s1442_s19  ;;  %s22_s16 = int_to_ptr.vmem [resolvable:$true] %s21_s16 }
  0x17   :  { %p1446_p9 = scmp.lt.u32.totalorder %s1442_s19, %s1695_s0 }
  0x19   :  { %p1448_p10 = pnand %p1446_p9, %p1443_p8 }
  0x1b   :  { %1451 = shalt.err (!%p1448_p10)
}
  0x1c   :  { %s1452_s24 = scalar_lea.vmem %s22_s16, 128  ;;  %s1456_s1 = scalar_lea.vmem %s22_s16, 512 }
  0x1d   :  { %p1453_p11 = scmp.ne.s32.totalorder %s22_s16, %s1452_s24  ;;  %p1457_p12 = scmp.lt.s32.totalorder %s22_s16, %s22_s16 }
  0x1e   :  { %p1458_p13 = scmp.lt.s32.totalorder %s1456_s1, %s1452_s24 }
  0x20   :  { %p1459_p0 = por %p1458_p13, %p1457_p12 }
  0x22   :  { %p1460_p1 = pnand %p1459_p0, %p1453_p11 }
  0x24   :  { %1463 = shalt.err (!%p1460_p1)
}
  0x25   :  { %s1542_s25 = smov 128   ;;  %s1543_s26 = smov 8  }
  0x26   :  { %27 = dma.hbm_to_vmem [thread:$0]  %s1695_s0, 128, %s22_s16, [#allocation3], %s1542_s25, %s1542_s25, %s1543_s26  }
  0x27   :  { %s1544_s29 = smov [#allocation7]   ;;  %s1545_s8 = smov [#allocation8]  }
  0x28   :  { %s47_s30 = sshll.u32 %s1544_s29, 4  ;;  %s61_s9 = sshll.u32 %s1545_s8, 4  ;;  %s48_s30 = int_to_ptr.vmem [resolvable:$true] %s47_s30  ;;  %s1619_s9 = int_to_ptr.vmem [resolvable:$true] %s61_s9 }
  0x29   :  { %s1464_s14 = scalar_lea.hbm %s1698_s3, 1024 }
  0x2a   :  { %p1465_p2 = scmp.ne.s32.totalorder %s1698_s3, %s1464_s14  ;;  %p1468_p3 = scmp.lt.u32.totalorder %s1464_s14, %s1698_s3 }
  0x2c   :  { %p1470_p4 = pnand %p1468_p3, %p1465_p2 }
  0x2e   :  { %1473 = shalt.err (!%p1470_p4)
}
  0x2f   :  { %s1474_s0 = scalar_lea.vmem %s48_s30, 1024  ;;  %p1479_p6 = scmp.lt.s32.totalorder %s48_s30, %s48_s30 }
  0x30   :  { %p1475_p5 = scmp.ne.s32.totalorder %s48_s30, %s1474_s0  ;;  %p1480_p7 = scmp.lt.s32.totalorder %s1474_s0, %s1474_s0 }
  0x32   :  { %p1481_p8 = por %p1480_p7, %p1479_p6 }
  0x34   :  { %p1482_p9 = pnand %p1481_p8, %p1475_p5 }
  0x36   :  { %1485 = shalt.err (!%p1482_p9)
}
  0x37   :  { %53 = dma.hbm_to_vmem [thread:$0]  %s1698_s3, 1024, %s48_s30, [#allocation6], %s1539_s11, %s1539_s11, %s1540_s12  }
  0x38   :  { %s1486_s23 = scalar_lea.hbm %s1700_s5, 1024 }
  0x39   :  { %p1487_p10 = scmp.ne.s32.totalorder %s1700_s5, %s1486_s23  ;;  %p1490_p11 = scmp.lt.u32.totalorder %s1486_s23, %s1700_s5 }
  0x3b   :  { %p1492_p12 = pnand %p1490_p11, %p1487_p10 }
  0x3d   :  { %1495 = shalt.err (!%p1492_p12)
}
  0x3e   :  { %s1496_s27 = scalar_lea.vmem %s1619_s9, 1024  ;;  %p1501_p0 = scmp.lt.s32.totalorder %s1619_s9, %s1619_s9 }
  0x3f   :  { %p1497_p13 = scmp.ne.s32.totalorder %s1619_s9, %s1496_s27  ;;  %p1502_p1 = scmp.lt.s32.totalorder %s1496_s27, %s1496_s27 }
  0x41   :  { %p1503_p2 = por %p1502_p1, %p1501_p0 }
  0x43   :  { %p1504_p3 = pnand %p1503_p2, %p1497_p13 }
  0x45   :  { %1507 = shalt.err (!%p1504_p3)
}
  0x46   :  { %67 = dma.hbm_to_vmem [thread:$0]  %s1700_s5, 1024, %s1619_s9, [#allocation9], %s1539_s11, %s1539_s11, %s1540_s12  }
  0x47   :  { %1530 = dma.done.wait [#allocation3], 512  }
  0x48   :  { %1531 = vsyncadd [#allocation3], 4294966784 }
  0x49   :  { %1532 = dma.done.wait [#allocation6], 9216  }
  0x4a   :  { %1533 = vsyncadd [#allocation6], 4294958080 }
  0x4b   :  { %1534 = dma.done.wait [#allocation9], 1024  }
  0x4c   :  { %1535 = vsyncadd [#allocation9], 4294966272  ;;  %v1334_v0 = vld [vmem:[#allocation5 + $0x40] sm:$0xff]   ;;  %v1338_v4 = vld [vmem:[#allocation5 + $0x48] sm:$0xff]   ;;  %v1546_v24 = vmov 1966171168   ;;  %v233_v26 = vlaneseq }
  0x4d   :  { %v1335_v1 = vld [vmem:[#allocation5 + $0xc0] sm:$0xff]   ;;  %1174 = vmatprep.subr.bf16.mxu0 %v1334_v0  ;;  %v1339_v5 = vld [vmem:[#allocation5 + $0xc8] sm:$0xff]   ;;  %v1342_v8 = vld [vmem:[#allocation5 + $0x50] sm:$0xff]   ;;  %v231_v25 = vunpack.c.l.s4 %v1546_v24  ;;  %vm1548_vm0 = vmmov 0  }
  0x4e   :  { %v1336_v2 = vld [vmem:[#allocation5] sm:$0xff]   ;;  %1196 = vmatprep.subr.bf16.mxu1 %v1335_v1  ;;  %v1340_v6 = vld [vmem:[#allocation5 + $0x8] sm:$0xff]   ;;  %v1343_v9 = vld [vmem:[#allocation5 + $0xd0] sm:$0xff]   ;;  %v234_v32 = vshrl.u32 %v233_v26, 7 }
  0x4f   :  { %v1337_v3 = vld [vmem:[#allocation5 + $0x80] sm:$0xff]   ;;  %1175 = vmatpush3.bf16.msra.mxu0 %v1336_v2  ;;  %v1341_v7 = vld [vmem:[#allocation5 + $0x88] sm:$0xff]   ;;  %v1344_v10 = vld [vmem:[#allocation5 + $0x10] sm:$0xff]   ;;  %v232_v31 = vunpack.c.0.s8 %v231_v25 }
  0x50   :  { %1197 = vmatpush3.bf16.msra.mxu1 %v1337_v3  ;;  %1176 = vmatprep.subr.bf16.mxu0 %v1338_v4  ;;  %v1345_v11 = vld [vmem:[#allocation5 + $0x90] sm:$0xff]   ;;  %v1346_v12 = vld [vmem:[#allocation5 + $0x58] sm:$0xff]   ;;  %v1350_v16 = vld [vmem:[#allocation5 + $0x60] sm:$0xff]  }
  0x51   :  { %1198 = vmatprep.subr.bf16.mxu1 %v1339_v5  ;;  %v1347_v13 = vld [vmem:[#allocation5 + $0xd8] sm:$0xff]   ;;  %v1351_v17 = vld [vmem:[#allocation5 + $0xe0] sm:$0xff]   ;;  %v1354_v20 = vld [vmem:[#allocation5 + $0x68] sm:$0xff]   ;;  %v1656_v37 = vsub.s32 %v232_v31, %v234_v32 }
  0x52   :  { %v1348_v14 = vld [vmem:[#allocation5 + $0x18] sm:$0xff]   ;;  %v1352_v18 = vld [vmem:[#allocation5 + $0x20] sm:$0xff]   ;;  %v1355_v21 = vld [vmem:[#allocation5 + $0xe8] sm:$0xff]  }
  0x53   :  { %1177 = vmatpush3.bf16.msra.mxu0 %v1340_v6  ;;  %v1349_v15 = vld [vmem:[#allocation5 + $0x98] sm:$0xff]   ;;  %v1353_v19 = vld [vmem:[#allocation5 + $0xa0] sm:$0xff]   ;;  %v1356_v22 = vld [vmem:[#allocation5 + $0x28] sm:$0xff]  }
  0x54   :  { %1199 = vmatpush3.bf16.msra.mxu1 %v1341_v7  ;;  %1178 = vmatprep.subr.bf16.mxu0 %v1342_v8  ;;  %v1357_v23 = vld [vmem:[#allocation5 + $0xa8] sm:$0xff]   ;;  %v1358_v27 = vld [vmem:[#allocation5 + $0x70] sm:$0xff]   ;;  %v1362_v33 = vld [vmem:[#allocation5 + $0x78] sm:$0xff]  }
  0x55   :  { %1200 = vmatprep.subr.bf16.mxu1 %v1343_v9  ;;  %v1359_v28 = vld [vmem:[#allocation5 + $0xf0] sm:$0xff]   ;;  %v1363_v34 = vld [vmem:[#allocation5 + $0xf8] sm:$0xff]   ;;  %v1366_v38 = vld [vmem:[#allocation2] ss:$8 sps:$4 sm:$0xff]  }
  0x56   :  { %v1360_v29 = vld [vmem:[#allocation5 + $0x30] sm:$0xff]   ;;  %v1364_v35 = vld [vmem:[#allocation5 + $0x38] sm:$0xff]   ;;  %v1368_v39 = vld [vmem:[#allocation2 + $0x4] ss:$8 sps:$4 sm:$0xff]   ;;  %v236_v42 = vrot.slane %v1366_v38, %v1656_v37 }
  0x57   :  { %1179 = vmatpush3.bf16.msra.mxu0 %v1344_v10  ;;  %v1361_v30 = vld [vmem:[#allocation5 + $0xb0] sm:$0xff]   ;;  %v1365_v36 = vld [vmem:[#allocation5 + $0xb8] sm:$0xff]   ;;  %v1372_v43 = vld [vmem:[#allocation5 + $0x140] sm:$0xff]   ;;  %v1660_v44 = vrot.slane %v1368_v39, %v1656_v37 }
  0x58   :  { %1201 = vmatpush3.bf16.msra.mxu1 %v1345_v11  ;;  %1180 = vmatprep.subr.bf16.mxu0 %v1346_v12  ;;  %v1369_v40 = vld [vmem:[#allocation2 + $0x10] ss:$8 sps:$4 sm:$0xff]   ;;  %v1371_v41 = vld [vmem:[#allocation2 + $0x14] ss:$8 sps:$4 sm:$0xff]   ;;  %v1373_v46 = vld [vmem:[#allocation5 + $0x1c0] sm:$0xff]  }
  0x59   :  { %1202 = vmatprep.subr.bf16.mxu1 %v1347_v13  ;;  %v250_v45 = vrot.slane %v1369_v40, %v1656_v37  ;;  %v1664_v47 = vrot.slane %v1371_v41, %v1656_v37  ;;  %v1374_v51 = vld [vmem:[#allocation5 + $0x100] sm:$0xff]   ;;  %v1376_v56 = vld [vmem:[#allocation5 + $0x148] sm:$0xff]   ;;  %v1380_v63 = vld [vmem:[#allocation5 + $0x150] sm:$0xff]  }
  0x5a   :  { %v1375_v54 = vld [vmem:[#allocation5 + $0x180] sm:$0xff]   ;;  %v1377_v59 = vld [vmem:[#allocation5 + $0x1c8] sm:$0xff]   ;;  %v1381_v0 = vld [vmem:[#allocation5 + $0x1d0] sm:$0xff]  }
  0x5b   :  { %1181 = vmatpush3.bf16.msra.mxu0 %v1348_v14  ;;  %v259_v48 = vcombine.high %v236_v42, %v250_v45  ;;  %v258_v49 = vcombine.low %v236_v42, %v250_v45  ;;  %v261_v50 = vcombine.high %v1660_v44, %v1664_v47  ;;  %v1378_v60 = vld [vmem:[#allocation5 + $0x108] sm:$0xff]   ;;  %v1382_v1 = vld [vmem:[#allocation5 + $0x110] sm:$0xff]   ;;  %v1384_v3 = vld [vmem:[#allocation5 + $0x158] sm:$0xff]  }
  0x5c   :  { %1203 = vmatpush3.bf16.msra.mxu1 %v1349_v15  ;;  %1182 = vmatprep.subr.bf16.mxu0 %v1350_v16  ;;  %v1379_v62 = vld [vmem:[#allocation5 + $0x188] sm:$0xff]   ;;  %v1383_v2 = vld [vmem:[#allocation5 + $0x190] sm:$0xff]   ;;  %v1385_v4 = vld [vmem:[#allocation5 + $0x1d8] sm:$0xff]  }
  0x5d   :  { %1204 = vmatprep.subr.bf16.mxu1 %v1351_v17  ;;  %v282_v52 = vrot.slane %v259_v48, %v1656_v37  ;;  %v268_v53 = vrot.slane %v258_v49, %v1656_v37  ;;  %v289_v55 = vrot.slane %v261_v50, %v1656_v37  ;;  %v1386_v5 = vld [vmem:[#allocation5 + $0x118] sm:$0xff]   ;;  %v1388_v7 = vld [vmem:[#allocation5 + $0x160] sm:$0xff]   ;;  %v1392_v11 = vld [vmem:[#allocation5 + $0x168] sm:$0xff]  }
  0x5e   :  { %v1387_v6 = vld [vmem:[#allocation5 + $0x198] sm:$0xff]   ;;  %v1389_v8 = vld [vmem:[#allocation5 + $0x1e0] sm:$0xff]   ;;  %v1393_v12 = vld [vmem:[#allocation5 + $0x1e8] sm:$0xff]  }
  0x5f   :  { %1183 = vmatpush3.bf16.msra.mxu0 %v1352_v18  ;;  %718 = vmatprep.mubr.bf16.mxu0 %v282_v52  ;;  %v292_v57 = vcombine.high %v282_v52, %v282_v52  ;;  %v290_v58 = vcombine.high %v268_v53, %v268_v53  ;;  %v293_v61 = vcombine.high %v289_v55, %v289_v55  ;;  %v1390_v9 = vld [vmem:[#allocation5 + $0x120] sm:$0xff]   ;;  %v1394_v13 = vld [vmem:[#allocation5 + $0x128] sm:$0xff]   ;;  %v1396_v15 = vld [vmem:[#allocation5 + $0x170] sm:$0xff]  }
  0x60   :  { %1205 = vmatpush3.bf16.msra.mxu1 %v1353_v19  ;;  %1184 = vmatprep.subr.bf16.mxu0 %v1354_v20  ;;  %v1391_v10 = vld [vmem:[#allocation5 + $0x1a0] sm:$0xff]   ;;  %v1395_v14 = vld [vmem:[#allocation5 + $0x1a8] sm:$0xff]   ;;  %v1397_v16 = vld [vmem:[#allocation5 + $0x1f0] sm:$0xff]  }
  0x61   :  { %1206 = vmatprep.subr.bf16.mxu1 %v1355_v21  ;;  %758 = vmatprep.mubr.bf16.mxu1 %v292_v57  ;;  %v1398_v17 = vld [vmem:[#allocation5 + $0x130] sm:$0xff]   ;;  %v1400_v19 = vld [vmem:[#allocation5 + $0x178] sm:$0xff]   ;;  %v260_v21 = vcombine.low %v1660_v44, %v1664_v47  ;;  %v1404_v26 = vld [vmem:[#allocation7] sm:$0xff]  }
  0x62   :  { %v1399_v18 = vld [vmem:[#allocation5 + $0x1b0] sm:$0xff]   ;;  %v1401_v20 = vld [vmem:[#allocation5 + $0x1f8] sm:$0xff]   ;;  %v1408_v31 = vld [vmem:[#allocation7 + $0x20] sm:$0xff]  }
  0x63   :  { %1185 = vmatpush3.bf16.msra.mxu0 %v1356_v22  ;;  %v1402_v22 = vld [vmem:[#allocation5 + $0x138] sm:$0xff]   ;;  %v275_v24 = vrot.slane %v260_v21, %v1656_v37  ;;  %v1409_v32 = vld [vmem:[#allocation7 + $0x28] sm:$0xff]   ;;  %v1414_v37 = vld [vmem:[#allocation8 + $0x10] sm:$0xff]  }
  0x64   :  { %1207 = vmatpush3.bf16.msra.mxu1 %v1357_v23  ;;  %1186 = vmatprep.subr.bf16.mxu0 %v1358_v27  ;;  %v1403_v23 = vld [vmem:[#allocation5 + $0x1b8] sm:$0xff]   ;;  %v1547_v27 = vmov 0.0   ;;  %v1416_v39 = vld [vmem:[#allocation8 + $0x20] sm:$0xff]   ;;  %v1417_v40 = vld [vmem:[#allocation8 + $0x28] sm:$0xff]  }
  0x65   :  { %1208 = vmatprep.subr.bf16.mxu1 %v1359_v28  ;;  %v291_v25 = vcombine.high %v275_v24, %v275_v24  ;;  %v1405_v28 = vld [vmem:[#allocation7 + $0x8] sm:$0xff]   ;;  %v1415_v38 = vld [vmem:[#allocation8 + $0x18] sm:$0xff]   ;;  %v1418_v41 = vld [vmem:[#allocation8 + $0x30] sm:$0xff]  }
  0x67   :  { %1187 = vmatpush3.bf16.msra.mxu0 %v1360_v29  ;;  %v1406_v29 = vld [vmem:[#allocation7 + $0x10] sm:$0xff]  }
  0x68   :  { %1209 = vmatpush3.bf16.msra.mxu1 %v1361_v30  ;;  %1188 = vmatprep.subr.bf16.mxu0 %v1362_v33  ;;  %v1407_v30 = vld [vmem:[#allocation7 + $0x18] sm:$0xff]   ;;  %v1410_v33 = vld [vmem:[#allocation7 + $0x30] sm:$0xff]  }
  0x69   :  { %1210 = vmatprep.subr.bf16.mxu1 %v1363_v34  ;;  %v1411_v34 = vld [vmem:[#allocation7 + $0x38] sm:$0xff]  }
  0x6b   :  { %1189 = vmatpush3.bf16.msra.mxu0 %v1364_v35  ;;  %v1412_v35 = vld [vmem:[#allocation8] sm:$0xff]  }
  0x6c   :  { %1211 = vmatpush3.bf16.msra.mxu1 %v1365_v36  ;;  %1218 = vmatprep.subr.bf16.mxu0 %v1372_v43  ;;  %v1413_v36 = vld [vmem:[#allocation8 + $0x8] sm:$0xff]   ;;  %v1091_v43 = vld [vmem:[%s1697_s2] ss:$0 sm:$0xff] }
  0x6d   :  { %1240 = vmatprep.subr.bf16.mxu1 %v1373_v46 }
  0x6e   :  { %719 = vmatmul.mubr.bf16.vlgmr.msra.gmra.mrb[0].mxu0 %v268_v53 }
  0x6f   :  { %1219 = vmatpush3.bf16.msra.mxu0 %v1374_v51  ;;  %759 = vmatmul.mubr.bf16.vlgmr.msra.gmra.mrb[0].mxu1 %v290_v58 }
  0x70   :  { %1220 = vmatprep.subr.bf16.mxu0 %v1376_v56  ;;  %1241 = vmatpush3.bf16.msra.mxu1 %v1375_v54 }
  0x71   :  { %798 = vmatprep.mubr.bf16.mxu0 %v289_v55  ;;  %1242 = vmatprep.subr.bf16.mxu1 %v1377_v59 }
  0x72   :  { %838 = vmatprep.mubr.bf16.mxu1 %v293_v61 }
  0x73   :  { %1221 = vmatpush3.bf16.msra.mxu0 %v1378_v60 }
  0x74   :  { %1222 = vmatprep.subr.bf16.mxu0 %v1380_v63  ;;  %1243 = vmatpush3.bf16.msra.mxu1 %v1379_v62 }
  0x75   :  { %1244 = vmatprep.subr.bf16.mxu1 %v1381_v0 }
  0x77   :  { %1223 = vmatpush3.bf16.msra.mxu0 %v1382_v1 }
  0x78   :  { %1224 = vmatprep.subr.bf16.mxu0 %v1384_v3  ;;  %1245 = vmatpush3.bf16.msra.mxu1 %v1383_v2 }
  0x79   :  { %1246 = vmatprep.subr.bf16.mxu1 %v1385_v4 }
  0x7b   :  { %1225 = vmatpush3.bf16.msra.mxu0 %v1386_v5  ;;  %v1419_v5 = vld [vmem:[#allocation8 + $0x38] sm:$0xff]  }
  0x7c   :  { %1226 = vmatprep.subr.bf16.mxu0 %v1388_v7  ;;  %1247 = vmatpush3.bf16.msra.mxu1 %v1387_v6  ;;  %v1156_v6 = vld [vmem:[%s1699_s4] ss:$0 sm:$0xff] }
  0x7d   :  { %1248 = vmatprep.subr.bf16.mxu1 %v1389_v8 }
  0x7f   :  { %1227 = vmatpush3.bf16.msra.mxu0 %v1390_v9 }
  0x80   :  { %1228 = vmatprep.subr.bf16.mxu0 %v1392_v11  ;;  %1249 = vmatpush3.bf16.msra.mxu1 %v1391_v10 }
  0x81   :  { %1250 = vmatprep.subr.bf16.mxu1 %v1393_v12 }
  0x83   :  { %1229 = vmatpush3.bf16.msra.mxu0 %v1394_v13  ;;  %v1165_v13 = vld [vmem:[%s1701_s6] ss:$0 sm:$0xff] }
  0x84   :  { %1230 = vmatprep.subr.bf16.mxu0 %v1396_v15  ;;  %1251 = vmatpush3.bf16.msra.mxu1 %v1395_v14 }
  0x85   :  { %1252 = vmatprep.subr.bf16.mxu1 %v1397_v16 }
  0x87   :  { %1231 = vmatpush3.bf16.msra.mxu0 %v1398_v17 }
  0x88   :  { %1232 = vmatprep.subr.bf16.mxu0 %v1400_v19  ;;  %1253 = vmatpush3.bf16.msra.mxu1 %v1399_v18 }
  0x89   :  { %1254 = vmatprep.subr.bf16.mxu1 %v1401_v20 }
  0x8b   :  { %1233 = vmatpush3.bf16.msra.mxu0 %v1402_v22 }
  0x8c   :  { %1255 = vmatpush3.bf16.msra.mxu1 %v1403_v23  ;;  %1280 = vmatprep.subr.bf16.mxu0 %v1547_v27 }
  0x8d   :  { %1300 = vmatprep.subr.bf16.mxu1 %v1547_v27 }
  0x8e   :  { %799 = vmatmul.mubr.bf16.vlgmr.msra.gmra.mrb[4].mxu0 %v275_v24 }
  0x8f   :  { %839 = vmatmul.mubr.bf16.vlgmr.msra.gmra.mrb[4].mxu1 %v291_v25  ;;  %1281 = vmatpush3.bf16.msra.mxu0 %v1404_v26 }
  0x90   :  { %1282 = vmatprep.subr.bf16.mxu0 %v1547_v27  ;;  %1296 = vmatprep.mubr.msk.bf16.mxu0 %vm1548_vm0, %v1547_v27 }
  0x91   :  { %1316 = vmatprep.mubr.msk.bf16.mxu1 %vm1548_vm0, %v1547_v27  ;;  %1301 = vmatpush3.bf16.msra.mxu1 %v1412_v35 }
  0x92   :  { %1302 = vmatprep.subr.bf16.mxu1 %v1547_v27 }
  0x93   :  { %1283 = vmatpush3.bf16.msra.mxu0 %v1405_v28 }
  0x94   :  { %1284 = vmatprep.subr.bf16.mxu0 %v1547_v27 }
  0x95   :  { %1303 = vmatpush3.bf16.msra.mxu1 %v1413_v36 }
  0x96   :  { %1304 = vmatprep.subr.bf16.mxu1 %v1547_v27 }
  0x97   :  { %1285 = vmatpush3.bf16.msra.mxu0 %v1406_v29 }
  0x98   :  { %1286 = vmatprep.subr.bf16.mxu0 %v1547_v27 }
  0x99   :  { %1305 = vmatpush3.bf16.msra.mxu1 %v1414_v37 }
  0x9a   :  { %1306 = vmatprep.subr.bf16.mxu1 %v1547_v27 }
  0x9b   :  { %1287 = vmatpush3.bf16.msra.mxu0 %v1407_v30 }
  0x9c   :  { %1288 = vmatprep.subr.bf16.mxu0 %v1547_v27 }
  0x9d   :  { %1307 = vmatpush3.bf16.msra.mxu1 %v1415_v38 }
  0x9e   :  { %1308 = vmatprep.subr.bf16.mxu1 %v1547_v27 }
  0x9f   :  { %1289 = vmatpush3.bf16.msra.mxu0 %v1408_v31 }
  0xa0   :  { %1290 = vmatprep.subr.bf16.mxu0 %v1547_v27 }
  0xa1   :  { %1309 = vmatpush3.bf16.msra.mxu1 %v1416_v39 }
  0xa2   :  { %1310 = vmatprep.subr.bf16.mxu1 %v1547_v27 }
  0xa3   :  { %1291 = vmatpush3.bf16.msra.mxu0 %v1409_v32 }
  0xa4   :  { %1292 = vmatprep.subr.bf16.mxu0 %v1547_v27 }
  0xa5   :  { %1311 = vmatpush3.bf16.msra.mxu1 %v1417_v40 }
  0xa6   :  { %1312 = vmatprep.subr.bf16.mxu1 %v1547_v27 }
  0xa7   :  { %1293 = vmatpush3.bf16.msra.mxu0 %v1410_v33 }
  0xa8   :  { %1294 = vmatprep.subr.bf16.mxu0 %v1547_v27 }
  0xa9   :  { %1313 = vmatpush3.bf16.msra.mxu1 %v1418_v41 }
  0xaa   :  { %1314 = vmatprep.subr.bf16.mxu1 %v1547_v27 }
  0xab   :  { %1295 = vmatpush3.bf16.msra.mxu0 %v1411_v34 }
  0xad   :  { %1315 = vmatpush3.bf16.msra.mxu1 %v1419_v5 }
 0x141   :  { %v1190_v42 = vpop.f32.mrb[0].mxu0 }
 0x142   :  { %v1191_v44 = vpop.f32.mrb[1].mxu0  ;;  %v1212_v45 = vpop.f32.mrb[0].mxu1 }
 0x143   :  { %v1192_v46 = vadd.f32 %v1191_v44, %v1190_v42  ;;  %v1193_v47 = vpop.f32.mrb[2].mxu0  ;;  %v1213_v48 = vpop.f32.mrb[1].mxu1 }
 0x144   :  { %v1194_v49 = vpop.f32.mrb[3].mxu0  ;;  %v1214_v51 = vadd.f32 %v1213_v48, %v1212_v45  ;;  %v1215_v52 = vpop.f32.mrb[2].mxu1 }
 0x145   :  { %v721_v50 = vadd.f32 %v1192_v46, %v1091_v43  ;;  %v1216_v53 = vpop.f32.mrb[3].mxu1 }
 0x147   :  { %v761_v54 = vadd.f32 %v1214_v51, %v721_v50 }
 0x161   :  { %v1234_v55 = vpop.f32.mrb[4].mxu0 }
 0x162   :  { %v1235_v56 = vpop.f32.mrb[5].mxu0  ;;  %v1256_v57 = vpop.f32.mrb[4].mxu1 }
 0x163   :  { %v1236_v58 = vadd.f32 %v1235_v56, %v1234_v55  ;;  %v1237_v59 = vpop.f32.mrb[6].mxu0  ;;  %v1257_v60 = vpop.f32.mrb[5].mxu1 }
 0x164   :  { %v1238_v61 = vpop.f32.mrb[7].mxu0  ;;  %v1258_v63 = vadd.f32 %v1257_v60, %v1256_v57  ;;  %v1259_v0 = vpop.f32.mrb[6].mxu1 }
 0x165   :  { %v801_v62 = vadd.f32 %v1236_v58, %v761_v54  ;;  %v1260_v1 = vpop.f32.mrb[7].mxu1 }
 0x167   :  { %v841_v2 = vadd.f32 %v1258_v63, %v801_v62 }
 0x169   :  { %v846_v3 = vmax.f32 %v841_v2, 0.0 }
 0x16b   :  { %v847_v4 = vpack.c.bf16 %v846_v3, %v846_v3 }
 0x16d   :  { %1297 = vmatmul.mubr.bf16.vlgmr.msra.gmra.mrb[8].mxu0 %v847_v4 }
 0x240   :  { %v953_v7 = vpop.f32.mrb[8].mxu0 }
 0x241   :  { %v954_v8 = vadd.f32 %v1156_v6, %v953_v7  ;;  %v1298_v9 = vpop.f32.mrb[9].mxu0 }
 0x242   :  { %v956_v10 = vpop.f32.mrb[10].mxu0 }
 0x243   :  { %v959_v11 = vpack.c.bf16 %v954_v8, %v954_v8  ;;  %v1299_v12 = vpop.f32.mrb[11].mxu0 }
 0x245   :  { %1317 = vmatmul.mubr.bf16.vlgmr.msra.gmra.mrb[8].mxu1 %v959_v11 }
 0x318   :  { %v1065_v14 = vpop.f32.mrb[8].mxu1 }
 0x319   :  { %v1066_v15 = vadd.f32 %v1165_v13, %v1065_v14  ;;  %v1318_v16 = vpop.f32.mrb[9].mxu1 }
 0x31a   :  { %v1068_v17 = vpop.f32.mrb[10].mxu1 }
 0x31b   :  { %1071 = vst [vmem:[#allocation10] sm:$0xff] %v1066_v15  ;;  %v1319_v18 = vpop.f32.mrb[11].mxu1 }
 0x31c   :  { %1076 = vsyncadd [#allocation4], 96  ;;  %s1549_s8 = smov [#allocation10]  }
 0x31d   :  { %s1077_s4 = sshll.u32 %s1549_s8, 4  ;;  %s1078_s4 = int_to_ptr.vmem [resolvable:$true] %s1077_s4 }
 0x31e   :  { %s1508_s9 = scalar_lea.vmem %s1078_s4, 32  ;;  %s1512_s10 = scalar_lea.vmem %s1078_s4, 128 }
 0x31f   :  { %p1509_p4 = scmp.ne.s32.totalorder %s1078_s4, %s1508_s9  ;;  %p1513_p5 = scmp.lt.s32.totalorder %s1078_s4, %s1078_s4 }
 0x320   :  { %p1514_p6 = scmp.lt.s32.totalorder %s1512_s10, %s1508_s9 }
 0x322   :  { %p1515_p7 = por %p1514_p6, %p1513_p5 }
 0x324   :  { %p1516_p8 = pnand %p1515_p7, %p1509_p4 }
 0x326   :  { %1519 = shalt.err (!%p1516_p8)
}
 0x327   :  { %s1520_s14 = scalar_lea.hbm %s1702_s7, 32 }
 0x328   :  { %p1521_p9 = scmp.ne.s32.totalorder %s1702_s7, %s1520_s14  ;;  %p1524_p10 = scmp.lt.u32.totalorder %s1520_s14, %s1702_s7 }
 0x32a   :  { %p1526_p11 = pnand %p1524_p10, %p1521_p9 }
 0x32c   :  { %1529 = shalt.err (!%p1526_p11)
}
 0x32d   :  { %s1550_s0 = smov 32   ;;  %s1551_s16 = smov 2  }
 0x32e   :  { %1083 = dma.vmem_to_hbm [thread:$0]  %s1078_s4, 32, %s1702_s7, [#allocation4], %s1550_s0, %s1550_s0, %s1551_s16  }
 0x32f   :  { %1536 = dma.done.wait [#allocation4], 128  }
 0x330   :  { %1537 = vsyncadd [#allocation4], 4294967168 }
 0x331   :  { %1087 = vsyncpa [#allocation3], 1 }
 0x332   :  { %1088 = vsyncpa [#allocation6], 1 }
 0x333   :  { %1089 = vsyncpa [#allocation9], 1 }
 0x334   :  { %1090 = vsyncpa [#allocation4], 1 }

</bundles_post_ra>
